<compile_context>
chip_gen: v7x
topology: tpu7x:2x2x1
jax: 0.10.0
libtpu: 0.0.40
codegen_flags: <defaults>
</compile_context>

<pallas_src>
import functools
import math

import jax
import jax.numpy as jnp
from jax import lax
from jax.experimental import pallas as pl
from jax.experimental.pallas import tpu as pltpu


def _mha_kernel(q_ref, k_ref, v_ref,
                wq_ref, wk_ref, wv_ref, wo_ref,
                bq_ref, bk_ref, bv_ref, bo_ref,
                o_ref, acc_ref, *, scale):
    h_idx = pl.program_id(1)

    q = q_ref[...].astype(jnp.float32)   # (S, D)
    k = k_ref[...].astype(jnp.float32)
    v = v_ref[...].astype(jnp.float32)

    # Per-head projections: (S, D) @ (D, d_k) -> (S, d_k) on the MXU.
    qh = jnp.dot(q, wq_ref[...], preferred_element_type=jnp.float32) + bq_ref[...]
    kh = jnp.dot(k, wk_ref[...], preferred_element_type=jnp.float32) + bk_ref[...]
    vh = jnp.dot(v, wv_ref[...], preferred_element_type=jnp.float32) + bv_ref[...]

    # scores = Q_h @ K_h^T / sqrt(d_k).  The reference module has no softmax;
    # mask is None and dropout is identity in eval mode.
    scores = jnp.dot(qh, kh.T, preferred_element_type=jnp.float32) * scale
    ctx = jnp.dot(scores, vh, preferred_element_type=jnp.float32)       # (S, d_k)

    # Per-head slice of the output projection: (S, d_k) @ (d_k, D) -> (S, D).
    contrib = jnp.dot(ctx, wo_ref[...], preferred_element_type=jnp.float32)

    @pl.when(h_idx == 0)
    def _():
        acc_ref[...] = jnp.broadcast_to(bo_ref[...].astype(jnp.float32),
                                        acc_ref.shape)

    acc_ref[...] += contrib

    @pl.when(h_idx == pl.num_programs(1) - 1)
    def _():
        o_ref[...] = acc_ref[...].astype(o_ref.dtype)


def mha_forward(q, k, v, params, *, h):
    """MultiHeadAttentionBlock forward (mask=None, eval-mode dropout).

    q, k, v : (B, S, D) float32
    params  : dict with 'wq','wk','wv','wo' of shape (D, D) stored in
              x @ W layout (i.e. the transpose of torch Linear.weight) and
              'bq','bk','bv','bo' of shape (D,).
    """
    B, S, D = q.shape
    assert k.shape == (B, S, D) and v.shape == (B, S, D)
    assert D % h == 0, "d_model must be divisible by h"
    d_k = D // h
    scale = 1.0 / math.sqrt(d_k)

    # Pre-split the projection weights per head once in the wrapper (plain
    # XLA, done once) so the kernel never reshapes across lanes.
    wq_h = params["wq"].reshape(D, h, d_k).transpose(1, 0, 2)   # (h, D, d_k)
    wk_h = params["wk"].reshape(D, h, d_k).transpose(1, 0, 2)
    wv_h = params["wv"].reshape(D, h, d_k).transpose(1, 0, 2)
    wo_h = params["wo"].reshape(h, d_k, D)                      # (h, d_k, D)
    bq_h = params["bq"].reshape(h, 1, d_k)
    bk_h = params["bk"].reshape(h, 1, d_k)
    bv_h = params["bv"].reshape(h, 1, d_k)
    bo = params["bo"].reshape(1, D)

    # VMEM budget: double-buffered q/k/v/out blocks + per-head weight blocks
    # + accumulator + matmul intermediates (lane-padded), with 2x headroom.
    # Clamped below v7x's 64 MiB physical VMEM.
    dk_pad = max(d_k, 128)
    est = 4 * (3 * S * D * 2           # q, k, v input blocks (double-buffered)
               + 4 * D * dk_pad * 2    # wq/wk/wv/wo per-head blocks
               + S * D * 2             # output block
               + S * D                 # accumulator scratch
               + S * S                 # score block
               + 5 * S * dk_pad        # qh/kh/vh/ctx intermediates
               + S * D)                # contrib
    vmem_limit = int(min(max(2 * est, 16 * 1024 * 1024), 48 * 1024 * 1024))

    kernel = functools.partial(_mha_kernel, scale=scale)

    out = pl.pallas_call(
        kernel,
        out_shape=jax.ShapeDtypeStruct((B, S, D), q.dtype),
        grid_spec=pltpu.PrefetchScalarGridSpec(
            num_scalar_prefetch=0,
            grid=(B, h),
            in_specs=[
                pl.BlockSpec((None, S, D), lambda b, hh: (b, 0, 0)),     # q
                pl.BlockSpec((None, S, D), lambda b, hh: (b, 0, 0)),     # k
                pl.BlockSpec((None, S, D), lambda b, hh: (b, 0, 0)),     # v
                pl.BlockSpec((None, D, d_k), lambda b, hh: (hh, 0, 0)),  # wq_h
                pl.BlockSpec((None, D, d_k), lambda b, hh: (hh, 0, 0)),  # wk_h
                pl.BlockSpec((None, D, d_k), lambda b, hh: (hh, 0, 0)),  # wv_h
                pl.BlockSpec((None, d_k, D), lambda b, hh: (hh, 0, 0)),  # wo_h
                pl.BlockSpec((None, 1, d_k), lambda b, hh: (hh, 0, 0)),  # bq_h
                pl.BlockSpec((None, 1, d_k), lambda b, hh: (hh, 0, 0)),  # bk_h
                pl.BlockSpec((None, 1, d_k), lambda b, hh: (hh, 0, 0)),  # bv_h
                pl.BlockSpec((1, D), lambda b, hh: (0, 0)),              # bo
            ],
            out_specs=pl.BlockSpec((None, S, D), lambda b, hh: (b, 0, 0)),
            scratch_shapes=[pltpu.VMEM((S, D), jnp.float32)],
        ),
        compiler_params=pltpu.CompilerParams(
            dimension_semantics=("parallel", "arbitrary"),
            vmem_limit_bytes=vmem_limit,
        ),
    )(q, k, v, wq_h, wk_h, wv_h, wo_h, bq_h, bk_h, bv_h, bo)

    return out


def _reference_forward(q, k, v, params, *, h):
    """Pure-JAX reference matching the PyTorch module (no softmax, mask=None,
    eval-mode dropout)."""
    B, S, D = q.shape
    d_k = D // h
    prec = lax.Precision.HIGHEST

    Q = jnp.dot(q, params["wq"], precision=prec) + params["bq"]
    K = jnp.dot(k, params["wk"], precision=prec) + params["bk"]
    V = jnp.dot(v, params["wv"], precision=prec) + params["bv"]

    def split(x):
        return x.reshape(B, S, h, d_k).transpose(0, 2, 1, 3)

    Qh, Kh, Vh = split(Q), split(K), split(V)
    scores = jnp.einsum("bhqd,bhkd->bhqk", Qh, Kh, precision=prec) / math.sqrt(d_k)
    ctx = jnp.einsum("bhqk,bhkd->bhqd", scores, Vh, precision=prec)
    ctx = ctx.transpose(0, 2, 1, 3).reshape(B, S, D)
    return jnp.dot(ctx, params["wo"], precision=prec) + params["bo"]


if __name__ == "__main__":
    key = jax.random.PRNGKey(0)
    # Small but lane-dense shapes: d_model multiple of 128 keeps the output
    # block unmasked on store; seq is a multiple of 8 (sublane-aligned).
    B, S, D, H = 2, 16, 128, 4
    keys = jax.random.split(key, 11)
    wscale = 1.0 / math.sqrt(D)

    q = jax.random.normal(keys[0], (B, S, D), dtype=jnp.float32)
    k = jax.random.normal(keys[1], (B, S, D), dtype=jnp.float32)
    v = jax.random.normal(keys[2], (B, S, D), dtype=jnp.float32)
    params = {
        "wq": jax.random.normal(keys[3], (D, D), jnp.float32) * wscale,
        "wk": jax.random.normal(keys[4], (D, D), jnp.float32) * wscale,
        "wv": jax.random.normal(keys[5], (D, D), jnp.float32) * wscale,
        "wo": jax.random.normal(keys[6], (D, D), jnp.float32) * wscale,
        "bq": jax.random.normal(keys[7], (D,), jnp.float32) * wscale,
        "bk": jax.random.normal(keys[8], (D,), jnp.float32) * wscale,
        "bv": jax.random.normal(keys[9], (D,), jnp.float32) * wscale,
        "bo": jax.random.normal(keys[10], (D,), jnp.float32) * wscale,
    }

    out = mha_forward(q, k, v, params, h=H)
    out = jax.block_until_ready(out)

    ref = _reference_forward(q, k, v, params, h=H)
    assert out.shape == (B, S, D)
    max_err = float(jnp.max(jnp.abs(out - ref)))
    assert jnp.allclose(out, ref, atol=5e-3, rtol=5e-3), f"mismatch vs reference: {max_err}"

    print("KERNEL_OK")
</pallas_src>

<mosaic_0001>
module attributes {stable_mosaic.version = 11 : i64} {
  func.func @_mha_kernel(%arg0: i32, %arg1: i32, %arg2: memref<1x16x128xf32, #tpu.memory_space<vmem>>, %arg3: memref<1x16x128xf32, #tpu.memory_space<vmem>>, %arg4: memref<1x16x128xf32, #tpu.memory_space<vmem>>, %arg5: memref<1x128x32xf32, #tpu.memory_space<vmem>>, %arg6: memref<1x128x32xf32, #tpu.memory_space<vmem>>, %arg7: memref<1x128x32xf32, #tpu.memory_space<vmem>>, %arg8: memref<1x32x128xf32, #tpu.memory_space<vmem>>, %arg9: memref<1x1x32xf32, #tpu.memory_space<vmem>>, %arg10: memref<1x1x32xf32, #tpu.memory_space<vmem>>, %arg11: memref<1x1x32xf32, #tpu.memory_space<vmem>>, %arg12: memref<1x128xf32, #tpu.memory_space<vmem>>, %arg13: memref<1x16x128xf32, #tpu.memory_space<vmem>>, %arg14: memref<16x128xf32, #tpu.memory_space<vmem>>) attributes {dimension_semantics = [#tpu.dimension_semantics<parallel>, #tpu.dimension_semantics<arbitrary>], iteration_bounds = array<i64: 2, 4>, scalar_prefetch = 0 : i64, scratch_operands = 1 : i64, tpu.core_type = #tpu.core_type<tc>, window_params = [{transform_indices = @transform_0, window_bounds = array<i64: 1, 16, 128>}, {transform_indices = @transform_1, window_bounds = array<i64: 1, 16, 128>}, {transform_indices = @transform_2, window_bounds = array<i64: 1, 16, 128>}, {transform_indices = @transform_3, window_bounds = array<i64: 1, 128, 32>}, {transform_indices = @transform_4, window_bounds = array<i64: 1, 128, 32>}, {transform_indices = @transform_5, window_bounds = array<i64: 1, 128, 32>}, {transform_indices = @transform_6, window_bounds = array<i64: 1, 32, 128>}, {transform_indices = @transform_7, window_bounds = array<i64: 1, 1, 32>}, {transform_indices = @transform_8, window_bounds = array<i64: 1, 1, 32>}, {transform_indices = @transform_9, window_bounds = array<i64: 1, 1, 32>}, {pipeline_mode = #tpu.pipeline_mode<synchronous>, transform_indices = @transform_10, window_bounds = array<i64: 1, 128>}, {transform_indices = @transform_11, window_bounds = array<i64: 1, 16, 128>}]} {
    %c0 = arith.constant 0 : index
    %c0_0 = arith.constant 0 : index
    %c0_1 = arith.constant 0 : index
    %0 = vector.load %arg2[%c0, %c0_0, %c0_1] : memref<1x16x128xf32, #tpu.memory_space<vmem>>, vector<1x16x128xf32>
    %1 = vector.shape_cast %0 : vector<1x16x128xf32> to vector<16x128xf32>
    %c0_2 = arith.constant 0 : index
    %c0_3 = arith.constant 0 : index
    %c0_4 = arith.constant 0 : index
    %2 = vector.load %arg3[%c0_2, %c0_3, %c0_4] : memref<1x16x128xf32, #tpu.memory_space<vmem>>, vector<1x16x128xf32>
    %3 = vector.shape_cast %2 : vector<1x16x128xf32> to vector<16x128xf32>
    %c0_5 = arith.constant 0 : index
    %c0_6 = arith.constant 0 : index
    %c0_7 = arith.constant 0 : index
    %4 = vector.load %arg4[%c0_5, %c0_6, %c0_7] : memref<1x16x128xf32, #tpu.memory_space<vmem>>, vector<1x16x128xf32>
    %5 = vector.shape_cast %4 : vector<1x16x128xf32> to vector<16x128xf32>
    %c0_8 = arith.constant 0 : index
    %c0_9 = arith.constant 0 : index
    %c0_10 = arith.constant 0 : index
    %6 = vector.load %arg5[%c0_8, %c0_9, %c0_10] : memref<1x128x32xf32, #tpu.memory_space<vmem>>, vector<1x128x32xf32>
    %7 = vector.shape_cast %6 : vector<1x128x32xf32> to vector<128x32xf32>
    %cst = arith.constant dense<0.000000e+00> : vector<16x32xf32>
    %8 = tpu.matmul %1, %7, %cst {dimension_numbers = #tpu.dot_dimension_numbers<[1], [0], [0], [1], [0, 0, 1, 1], [], []>} : vector<16x128xf32>, vector<128x32xf32>, vector<16x32xf32> -> vector<16x32xf32>
    %c0_11 = arith.constant 0 : index
    %c0_12 = arith.constant 0 : index
    %c0_13 = arith.constant 0 : index
    %9 = vector.load %arg9[%c0_11, %c0_12, %c0_13] : memref<1x1x32xf32, #tpu.memory_space<vmem>>, vector<1x1x32xf32>
    %10 = vector.shape_cast %9 : vector<1x1x32xf32> to vector<1x32xf32>
    %11 = vector.broadcast %10 : vector<1x32xf32> to vector<16x32xf32>
    %12 = arith.addf %8, %11 : vector<16x32xf32>
    %c0_14 = arith.constant 0 : index
    %c0_15 = arith.constant 0 : index
    %c0_16 = arith.constant 0 : index
    %13 = vector.load %arg6[%c0_14, %c0_15, %c0_16] : memref<1x128x32xf32, #tpu.memory_space<vmem>>, vector<1x128x32xf32>
    %14 = vector.shape_cast %13 : vector<1x128x32xf32> to vector<128x32xf32>
    %cst_17 = arith.constant dense<0.000000e+00> : vector<16x32xf32>
    %15 = tpu.matmul %3, %14, %cst_17 {dimension_numbers = #tpu.dot_dimension_numbers<[1], [0], [0], [1], [0, 0, 1, 1], [], []>} : vector<16x128xf32>, vector<128x32xf32>, vector<16x32xf32> -> vector<16x32xf32>
    %c0_18 = arith.constant 0 : index
    %c0_19 = arith.constant 0 : index
    %c0_20 = arith.constant 0 : index
    %16 = vector.load %arg10[%c0_18, %c0_19, %c0_20] : memref<1x1x32xf32, #tpu.memory_space<vmem>>, vector<1x1x32xf32>
    %17 = vector.shape_cast %16 : vector<1x1x32xf32> to vector<1x32xf32>
    %18 = vector.broadcast %17 : vector<1x32xf32> to vector<16x32xf32>
    %19 = arith.addf %15, %18 : vector<16x32xf32>
    %c0_21 = arith.constant 0 : index
    %c0_22 = arith.constant 0 : index
    %c0_23 = arith.constant 0 : index
    %20 = vector.load %arg7[%c0_21, %c0_22, %c0_23] : memref<1x128x32xf32, #tpu.memory_space<vmem>>, vector<1x128x32xf32>
    %21 = vector.shape_cast %20 : vector<1x128x32xf32> to vector<128x32xf32>
    %cst_24 = arith.constant dense<0.000000e+00> : vector<16x32xf32>
    %22 = tpu.matmul %5, %21, %cst_24 {dimension_numbers = #tpu.dot_dimension_numbers<[1], [0], [0], [1], [0, 0, 1, 1], [], []>} : vector<16x128xf32>, vector<128x32xf32>, vector<16x32xf32> -> vector<16x32xf32>
    %c0_25 = arith.constant 0 : index
    %c0_26 = arith.constant 0 : index
    %c0_27 = arith.constant 0 : index
    %23 = vector.load %arg11[%c0_25, %c0_26, %c0_27] : memref<1x1x32xf32, #tpu.memory_space<vmem>>, vector<1x1x32xf32>
    %24 = vector.shape_cast %23 : vector<1x1x32xf32> to vector<1x32xf32>
    %25 = vector.broadcast %24 : vector<1x32xf32> to vector<16x32xf32>
    %26 = arith.addf %22, %25 : vector<16x32xf32>
    %27 = tpu.transpose %19, [1, 0] : vector<16x32xf32> -> vector<32x16xf32>
    %cst_28 = arith.constant dense<0.000000e+00> : vector<16x16xf32>
    %28 = tpu.matmul %12, %27, %cst_28 {dimension_numbers = #tpu.dot_dimension_numbers<[1], [0], [0], [1], [0, 0, 1, 1], [], []>} : vector<16x32xf32>, vector<32x16xf32>, vector<16x16xf32> -> vector<16x16xf32>
    %cst_29 = arith.constant 0.176776692 : f32
    %29 = vector.broadcast %cst_29 : f32 to vector<16x16xf32>
    %30 = arith.mulf %28, %29 : vector<16x16xf32>
    %cst_30 = arith.constant dense<0.000000e+00> : vector<16x32xf32>
    %31 = tpu.matmul %30, %26, %cst_30 {dimension_numbers = #tpu.dot_dimension_numbers<[1], [0], [0], [1], [0, 0, 1, 1], [], []>} : vector<16x16xf32>, vector<16x32xf32>, vector<16x32xf32> -> vector<16x32xf32>
    %c0_31 = arith.constant 0 : index
    %c0_32 = arith.constant 0 : index
    %c0_33 = arith.constant 0 : index
    %32 = vector.load %arg8[%c0_31, %c0_32, %c0_33] : memref<1x32x128xf32, #tpu.memory_space<vmem>>, vector<1x32x128xf32>
    %33 = vector.shape_cast %32 : vector<1x32x128xf32> to vector<32x128xf32>
    %cst_34 = arith.constant dense<0.000000e+00> : vector<16x128xf32>
    %34 = tpu.matmul %31, %33, %cst_34 {dimension_numbers = #tpu.dot_dimension_numbers<[1], [0], [0], [1], [0, 0, 1, 1], [], []>} : vector<16x32xf32>, vector<32x128xf32>, vector<16x128xf32> -> vector<16x128xf32>
    %c0_i32 = arith.constant 0 : i32
    %35 = arith.cmpi eq, %arg1, %c0_i32 : i32
    %36 = arith.extui %35 : i1 to i32
    %c0_i32_35 = arith.constant 0 : i32
    %37 = arith.cmpi ne, %36, %c0_i32_35 : i32
    scf.if %37 {
      %c0_41 = arith.constant 0 : index
      %c0_42 = arith.constant 0 : index
      %44 = vector.load %arg12[%c0_41, %c0_42] : memref<1x128xf32, #tpu.memory_space<vmem>>, vector<1x128xf32>
      %45 = vector.shape_cast %44 : vector<1x128xf32> to vector<1x128xf32>
      %46 = vector.broadcast %45 : vector<1x128xf32> to vector<16x128xf32>
      %c0_43 = arith.constant 0 : index
      %c0_44 = arith.constant 0 : index
      %47 = vector.load %arg14[%c0_43, %c0_44] : memref<16x128xf32, #tpu.memory_space<vmem>>, vector<16x128xf32>
      tpu.vector_store %arg14[%c0_43, %c0_44], %46 {strides = array<i32>} : memref<16x128xf32, #tpu.memory_space<vmem>>, vector<16x128xf32>,
    } else {
    }
    %c0_36 = arith.constant 0 : index
    %c0_37 = arith.constant 0 : index
    %38 = vector.load %arg14[%c0_36, %c0_37] : memref<16x128xf32, #tpu.memory_space<vmem>>, vector<16x128xf32>
    %39 = arith.addf %38, %34 : vector<16x128xf32>
    %c0_38 = arith.constant 0 : index
    %c0_39 = arith.constant 0 : index
    %40 = vector.load %arg14[%c0_38, %c0_39] : memref<16x128xf32, #tpu.memory_space<vmem>>, vector<16x128xf32>
    tpu.vector_store %arg14[%c0_38, %c0_39], %39 {strides = array<i32>} : memref<16x128xf32, #tpu.memory_space<vmem>>, vector<16x128xf32>,
    %c3_i32 = arith.constant 3 : i32
    %41 = arith.cmpi eq, %arg1, %c3_i32 : i32
    %42 = arith.extui %41 : i1 to i32
    %c0_i32_40 = arith.constant 0 : i32
    %43 = arith.cmpi ne, %42, %c0_i32_40 : i32
    scf.if %43 {
      %c0_41 = arith.constant 0 : index
      %c0_42 = arith.constant 0 : index
      %44 = vector.load %arg14[%c0_41, %c0_42] : memref<16x128xf32, #tpu.memory_space<vmem>>, vector<16x128xf32>
      %c0_43 = arith.constant 0 : index
      %c0_44 = arith.constant 0 : index
      %c0_45 = arith.constant 0 : index
      %45 = vector.load %arg13[%c0_43, %c0_44, %c0_45] : memref<1x16x128xf32, #tpu.memory_space<vmem>>, vector<1x16x128xf32>
      %46 = vector.shape_cast %45 : vector<1x16x128xf32> to vector<16x128xf32>
      %47 = vector.shape_cast %44 : vector<16x128xf32> to vector<1x16x128xf32>
      tpu.vector_store %arg13[%c0_43, %c0_44, %c0_45], %47 {strides = array<i32>} : memref<1x16x128xf32, #tpu.memory_space<vmem>>, vector<1x16x128xf32>,
    } else {
    }
    return
  }
  func.func @transform_0(%arg0: i32, %arg1: i32) -> (i32, i32, i32) {
    %c0_i32 = arith.constant 0 : i32
    %c0_i32_0 = arith.constant 0 : i32
    %c0_i32_1 = arith.constant 0 : i32
    return %arg0, %c0_i32, %c0_i32_0 : i32, i32, i32
  }
  func.func @transform_1(%arg0: i32, %arg1: i32) -> (i32, i32, i32) {
    %c0_i32 = arith.constant 0 : i32
    %c0_i32_0 = arith.constant 0 : i32
    %c0_i32_1 = arith.constant 0 : i32
    return %arg0, %c0_i32, %c0_i32_0 : i32, i32, i32
  }
  func.func @transform_2(%arg0: i32, %arg1: i32) -> (i32, i32, i32) {
    %c0_i32 = arith.constant 0 : i32
    %c0_i32_0 = arith.constant 0 : i32
    %c0_i32_1 = arith.constant 0 : i32
    return %arg0, %c0_i32, %c0_i32_0 : i32, i32, i32
  }
  func.func @transform_3(%arg0: i32, %arg1: i32) -> (i32, i32, i32) {
    %c0_i32 = arith.constant 0 : i32
    %c0_i32_0 = arith.constant 0 : i32
    %c0_i32_1 = arith.constant 0 : i32
    return %arg1, %c0_i32, %c0_i32_0 : i32, i32, i32
  }
  func.func @transform_4(%arg0: i32, %arg1: i32) -> (i32, i32, i32) {
    %c0_i32 = arith.constant 0 : i32
    %c0_i32_0 = arith.constant 0 : i32
    %c0_i32_1 = arith.constant 0 : i32
    return %arg1, %c0_i32, %c0_i32_0 : i32, i32, i32
  }
  func.func @transform_5(%arg0: i32, %arg1: i32) -> (i32, i32, i32) {
    %c0_i32 = arith.constant 0 : i32
    %c0_i32_0 = arith.constant 0 : i32
    %c0_i32_1 = arith.constant 0 : i32
    return %arg1, %c0_i32, %c0_i32_0 : i32, i32, i32
  }
  func.func @transform_6(%arg0: i32, %arg1: i32) -> (i32, i32, i32) {
    %c0_i32 = arith.constant 0 : i32
    %c0_i32_0 = arith.constant 0 : i32
    %c0_i32_1 = arith.constant 0 : i32
    return %arg1, %c0_i32, %c0_i32_0 : i32, i32, i32
  }
  func.func @transform_7(%arg0: i32, %arg1: i32) -> (i32, i32, i32) {
    %c0_i32 = arith.constant 0 : i32
    %c0_i32_0 = arith.constant 0 : i32
    %c0_i32_1 = arith.constant 0 : i32
    return %arg1, %c0_i32, %c0_i32_0 : i32, i32, i32
  }
  func.func @transform_8(%arg0: i32, %arg1: i32) -> (i32, i32, i32) {
    %c0_i32 = arith.constant 0 : i32
    %c0_i32_0 = arith.constant 0 : i32
    %c0_i32_1 = arith.constant 0 : i32
    return %arg1, %c0_i32, %c0_i32_0 : i32, i32, i32
  }
  func.func @transform_9(%arg0: i32, %arg1: i32) -> (i32, i32, i32) {
    %c0_i32 = arith.constant 0 : i32
    %c0_i32_0 = arith.constant 0 : i32
    %c0_i32_1 = arith.constant 0 : i32
    return %arg1, %c0_i32, %c0_i32_0 : i32, i32, i32
  }
  func.func @transform_10(%arg0: i32, %arg1: i32) -> (i32, i32) {
    %c0_i32 = arith.constant 0 : i32
    %c0_i32_0 = arith.constant 0 : i32
    %c0_i32_1 = arith.constant 0 : i32
    return %c0_i32, %c0_i32_0 : i32, i32
  }
  func.func @transform_11(%arg0: i32, %arg1: i32) -> (i32, i32, i32) {
    %c0_i32 = arith.constant 0 : i32
    %c0_i32_0 = arith.constant 0 : i32
    %c0_i32_1 = arith.constant 0 : i32
    return %arg0, %c0_i32, %c0_i32_0 : i32, i32, i32
  }
}

</mosaic_0001>

<bundles_post_ra>
// kernel: tpu_custom_call.1
= control target key start
LH: loop header
LB: loop body
LE: loop exit
PB: predicated region body
PF: predicated region fallthrough
CT: control target
= control target key end

     0   :  { %s2181_s0 = inlined_call_operand.vmem [shape: f32[2,16,128], index: 0, kind: input, shape index: {}]   ;;  %s2182_s1 = inlined_call_operand.vmem [shape: f32[2,16,128], index: 1, kind: input, shape index: {}]   ;;  %s2183_s2 = inlined_call_operand.vmem [shape: f32[2,16,128], index: 2, kind: input, shape index: {}]   ;;  %s2184_s3 = inlined_call_operand.vmem [shape: f32[4,128,32], index: 3, kind: input, shape index: {}]   ;;  %s2185_s4 = inlined_call_operand.vmem [shape: f32[4,128,32], index: 4, kind: input, shape index: {}]   ;;  %s2186_s5 = inlined_call_operand.vmem [shape: f32[4,128,32], index: 5, kind: input, shape index: {}]   ;;  %s2187_s6 = inlined_call_operand.vmem [shape: f32[4,32,128], index: 6, kind: input, shape index: {}]   ;;  %s2188_s7 = inlined_call_operand.vmem [shape: f32[4,1,32], index: 7, kind: input, shape index: {}]   ;;  %s2189_s8 = inlined_call_operand.vmem [shape: f32[4,1,32], index: 8, kind: input, shape index: {}]   ;;  %s2190_s9 = inlined_call_operand.vmem [shape: f32[4,1,32], index: 9, kind: input, shape index: {}]   ;;  %s2191_s10 = inlined_call_operand.vmem [shape: f32[1,128], index: 10, kind: input, shape index: {}]   ;;  %s2192_s11 = inlined_call_operand.hbm [shape: f32[2,16,128], index: 11, kind: output, shape index: {}]  }
   0x1   :  { %2197 = sst [smem:[#allocation10_spill]] %s2181_s0 }
   0x2   :  { %2198 = sst [smem:[#allocation11_spill]] %s2184_s3 }
   0x3   :  { %2199 = sst [smem:[#allocation12_spill]] %s2185_s4 }
   0x4   :  { %16 = vsyncpa [#allocation4], 0 }
   0x5   :  { %18 = vsyncpa [#allocation4 + $0x1], 0  ;;  %s1920_s17 = smov 0   ;;  %s1922_s18 = smov 0  }
   0x6   :  { %s1924_s19 = smov 0   ;;  %s1926_s20 = smov 0  }
   0x7   :  { %s1928_s21 = smov 0   ;;  %s1930_s22 = smov 0  }
   0x8   :  { %s1932_s23 = smov 0   ;;  %s1934_s24 = smov 0  }
   0x9 LB: > { %2200 = sst [smem:[#allocation6_spill]] %s1847_s22  ;;  %s1329_s25 = sadd.s32 4294967295, %s1855_s24   ;;  %s1855_s24 = sphi %s1934_s24, %s24_s24   ;;  %s1851_s23 = sphi %s1932_s23, %s2213_s23   ;;  %s1847_s22 = sphi %s1930_s22, %s2212_s22   ;;  %s1843_s21 = sphi %s1928_s21, %s2211_s21   ;;  %s1839_s20 = sphi %s1926_s20, %s2210_s20   ;;  %s1835_s19 = sphi %s1924_s19, %s2216_s19   ;;  %s1831_s18 = sphi %s1922_s18, %s2215_s18   ;;  %s1827_s17 = sphi %s1920_s17, %s2214_s17  }
   0xa   : > { %2201 = sst [smem:[#allocation7_spill]] %s1851_s23  ;;  %s1330_s26 = sadd.s32 4294967294, %s1855_s24  }
   0xb   : > { %s33_s27 = sadd.s32 1, %s1847_s22  ;;  %s36_s28 = sadd.s32 1, %s1851_s23 }
   0xc   : > { %p34_p0 = scmp.ge.s32.totalorder %s33_s27, 4  ;;  %p334_p1 = scmp.ne.s32.totalorder %s1835_s19, %s1831_s18 }
   0xd   : > { %p335_p2 = scmp.eq.s32.totalorder %s1329_s25, 7  ;;  %p340_p4 = scmp.ne.s32.totalorder %s1831_s18, %s1827_s17 }
   0xe   : > { %s2218_s27 = smov (%p34_p0, %s33_s27), 0  ;;  %s2220_s28 = smov (!%p34_p0, %s36_s28), %s1851_s23 }
   0xf   : > { %2202 = sst [smem:[#allocation8_spill]] %s2218_s27  ;;  %p1969_p3 = por %p335_p2, %p334_p1 }
  0x10   : > { %p38_p5 = scmp.ge.s32.totalorder %s2220_s28, 2  ;;  %p341_p6 = scmp.eq.s32.totalorder %s1330_s26, 7 }
  0x11   : > { %p1333_p7 = scmp.ge.s32.totalorder %s1855_s24, 1  ;;  %p436_p8 = scmp.lt.s32.totalorder %s1855_s24, 9 }
  0x12   : > { %s2222_s28 = smov (%p38_p5, %s2220_s28), 0  ;;  %p1979_p9 = por %p341_p6, %p340_p4 }
  0x13   : > { %2204 = sst [smem:[#allocation9_spill]] %s2222_s28  ;;  %p437_p10 = pnand %p1333_p7, %p436_p8 }
  0x14   : > { %s321_s12 = ssub.s32 %s1851_s23, %s2222_s28  ;;  %s324_s13 = sadd.s32 1, %s1835_s19  ;;  %vm859_vm0 = vcmask (!%p437_p10), 261120   ;;  %vm949_vm2 = vcmask (!%p437_p10), 130048  }
  0x15   : > { %p322_p11 = scmp.eq.s32.totalorder %s321_s12, 0  ;;  %440 = sbr.rel (%p437_p10) target bundleno = 973 (0x3cd), region = 64  ;;  %vm1671_vm1 = vmpackc.low (!%p437_p10), %vm859_vm0, %vm859_vm0 }
  0x16   : > { %p530_p12 = scmp.lt.s32.totalorder (!%p437_p10), %s1839_s20, 3  ;;  %s2195_s15 = sand.u32 (!%p437_p10), 1, %s1831_s18  }
  0x17   : > { %s1987_s14 = scalar_select %p322_p11, %s1835_s19, %s324_s13  }
  0x18   : > { %s1993_s16 = sshll.u32 (!%p437_p10), %s2195_s15, 4  ;;  %p515_p13 = scmp.lt.s32.totalorder (!%p437_p10), %s1843_s21, 1 }
  0x19   : > { %s2206_s4 = sld [smem:[#allocation12_spill]] (!%p437_p10)  ;;  %s2207_s3 = sld [smem:[#allocation11_spill]] (!%p437_p10) }
  0x1a   : > { %s2208_s0 = sld [smem:[#allocation10_spill]] (!%p437_p10)  ;;  %p1360_p0 = scmp.ne.s32.totalorder (!%p437_p10), %s1839_s20, 0 }
  0x1c   : > { %s1997_s25 = scalar_select %p530_p12, %s1839_s20, 3 }
  0x1d   : > { %s516_s12 = scalar_select %p515_p13, %s1843_s21, 1 }
  0x1e   : > { %s2000_s26 = sshll.u32 %s1997_s25, 7 }
  0x1f   : > { %s2006_s28 = scalar_lea.vmem %s2206_s4, %s2000_s26  ;;  %s2012_s15 = scalar_lea.vmem %s2207_s3, %s2000_s26 }
  0x20   : > { %v663_v0 = vld [vmem:[%s2006_s28] sm:$0xff]  ;;  %v664_v1 = vld [vmem:[%s2006_s28 + $0x8] sm:$0xff]  ;;  %v665_v2 = vld [vmem:[%s2006_s28 + $0x10] sm:$0xff]  ;;  %s2025_s23 = sshll.u32 %s516_s12, 4  ;;  %s2067_s27 = scalar_lea.vmem %s2186_s5, %s2000_s26 }
  0x21   : > { %v1606_v3 = vpack.c.bf16 %v664_v1, %v663_v0  ;;  %v666_v4 = vld [vmem:[%s2006_s28 + $0x18] sm:$0xff]  ;;  %v565_v5 = vld [vmem:[%s2012_s15] sm:$0xff]  ;;  %v566_v6 = vld [vmem:[%s2012_s15 + $0x8] sm:$0xff]  ;;  %s2035_s12 = scalar_lea.vmem %s2182_s1, %s2025_s23  ;;  %s2043_s22 = scalar_lea.vmem %s2208_s0, %s2025_s23 }
  0x22   : > { %v1610_v7 = vpack.c.bf16 %v666_v4, %v665_v2  ;;  %v1574_v8 = vpack.c.bf16 %v566_v6, %v565_v5  ;;  %v667_v9 = vld [vmem:[%s2006_s28 + $0x20] sm:$0xff]  ;;  %v668_v10 = vld [vmem:[%s2006_s28 + $0x28] sm:$0xff]  ;;  %v567_v11 = vld [vmem:[%s2012_s15 + $0x10] sm:$0xff]  ;;  %s552_s0 = scalar_lea.vmem %s2188_s7, %s1997_s25 }
  0x23   : > { %1607 = vmatprep.subr.bf16.mxu1 %v1606_v3  ;;  %v568_v12 = vld [vmem:[%s2012_s15 + $0x18] sm:$0xff]  ;;  %v569_v14 = vld [vmem:[%s2012_s15 + $0x20] sm:$0xff]  ;;  %v570_v15 = vld [vmem:[%s2012_s15 + $0x28] sm:$0xff]  ;;  %v1614_v16 = vpack.c.bf16 %v668_v10, %v667_v9 }
  0x24   : > { %1609 = vmatpush3.bf16.msra.mxu1 %v1606_v3  ;;  %1575 = vmatprep.subr.bf16.mxu0 %v1574_v8  ;;  %v1578_v13 = vpack.c.bf16 %v568_v12, %v567_v11  ;;  %v669_v17 = vld [vmem:[%s2006_s28 + $0x30] sm:$0xff]  ;;  %v670_v18 = vld [vmem:[%s2006_s28 + $0x38] sm:$0xff]  ;;  %v1582_v19 = vpack.c.bf16 %v570_v15, %v569_v14  ;;  %v561_v23 = vld [vmem:[%s2035_s12] sm:$0xff] }
  0x25   : > { %1611 = vmatprep.subr.bf16.mxu1 %v1610_v7  ;;  %1577 = vmatpush3.bf16.msra.mxu0 %v1574_v8  ;;  %v571_v20 = vld [vmem:[%s2012_s15 + $0x30] sm:$0xff]  ;;  %v572_v21 = vld [vmem:[%s2012_s15 + $0x38] sm:$0xff]  ;;  %v1618_v22 = vpack.c.bf16 %v670_v18, %v669_v17  ;;  %v671_v24 = vld [vmem:[%s2006_s28 + $0x40] sm:$0xff] }
  0x26   : > { %1579 = vmatprep.subr.bf16.mxu0 %v1578_v13  ;;  %v672_v25 = vld [vmem:[%s2006_s28 + $0x48] sm:$0xff]  ;;  %v1586_v26 = vpack.c.bf16 %v572_v21, %v571_v20  ;;  %1511 = vmatprep.mubr.f32.mxu1 %v561_v23  ;;  %v573_v27 = vld [vmem:[%s2012_s15 + $0x40] sm:$0xff]  ;;  %v673_v31 = vld [vmem:[%s2006_s28 + $0x50] sm:$0xff] }
  0x27   : > { %v574_v28 = vld [vmem:[%s2012_s15 + $0x48] sm:$0xff]  ;;  %v559_v29 = vld [vmem:[%s2043_s22] sm:$0xff]  ;;  %v1622_v30 = vpack.c.bf16 %v672_v25, %v671_v24  ;;  %v674_v32 = vld [vmem:[%s2006_s28 + $0x58] sm:$0xff] }
  0x28   : > { %1613 = vmatpush3.bf16.msra.mxu1 %v1610_v7  ;;  %1476 = vmatprep.mubr.f32.mxu0 %v559_v29  ;;  %v1590_v33 = vpack.c.bf16 %v574_v28, %v573_v27  ;;  %v575_v34 = vld [vmem:[%s2012_s15 + $0x50] sm:$0xff]  ;;  %v576_v35 = vld [vmem:[%s2012_s15 + $0x58] sm:$0xff]  ;;  %v1626_v36 = vpack.c.bf16 %v674_v32, %v673_v31  ;;  %v675_v37 = vld [vmem:[%s2006_s28 + $0x60] sm:$0xff] }
  0x29   : > { %1615 = vmatprep.subr.bf16.mxu1 %v1614_v16  ;;  %1581 = vmatpush3.bf16.msra.mxu0 %v1578_v13  ;;  %v676_v38 = vld [vmem:[%s2006_s28 + $0x68] sm:$0xff]  ;;  %v1594_v39 = vpack.c.bf16 %v576_v35, %v575_v34  ;;  %v577_v40 = vld [vmem:[%s2012_s15 + $0x60] sm:$0xff]  ;;  %v677_v43 = vld [vmem:[%s2006_s28 + $0x70] sm:$0xff] }
  0x2a   : > { %1583 = vmatprep.subr.bf16.mxu0 %v1582_v19  ;;  %v578_v41 = vld [vmem:[%s2012_s15 + $0x68] sm:$0xff]  ;;  %v1630_v42 = vpack.c.bf16 %v676_v38, %v675_v37  ;;  %v678_v44 = vld [vmem:[%s2006_s28 + $0x78] sm:$0xff]  ;;  %v579_v46 = vld [vmem:[%s2012_s15 + $0x70] sm:$0xff] }
  0x2b   : > { %v1598_v45 = vpack.c.bf16 %v578_v41, %v577_v40  ;;  %v580_v47 = vld [vmem:[%s2012_s15 + $0x78] sm:$0xff]  ;;  %v1634_v48 = vpack.c.bf16 %v678_v44, %v677_v43  ;;  %v761_v50 = vld [vmem:[%s2067_s27] sm:$0xff]  ;;  %v762_v51 = vld [vmem:[%s2067_s27 + $0x8] sm:$0xff]  ;;  %s529_s15 = scalar_lea.vmem %s2183_s2, %s2025_s23 }
  0x2c   : > { %1617 = vmatpush3.bf16.msra.mxu1 %v1614_v16  ;;  %v1602_v49 = vpack.c.bf16 %v580_v47, %v579_v46  ;;  %v1638_v52 = vpack.c.bf16 %v762_v51, %v761_v50  ;;  %v763_v53 = vld [vmem:[%s2067_s27 + $0x10] sm:$0xff]  ;;  %v764_v54 = vld [vmem:[%s2067_s27 + $0x18] sm:$0xff]  ;;  %v562_v55 = vld [vmem:[%s2035_s12 + $0x8] sm:$0xff]  ;;  %s555_s12 = scalar_lea.vmem %s2189_s8, %s1997_s25 }
  0x2d   : > { %1619 = vmatprep.subr.bf16.mxu1 %v1618_v22  ;;  %1585 = vmatpush3.bf16.msra.mxu0 %v1582_v19  ;;  %v560_v56 = vld [vmem:[%s2043_s22 + $0x8] sm:$0xff]  ;;  %v1642_v57 = vpack.c.bf16 %v764_v54, %v763_v53  ;;  %v765_v58 = vld [vmem:[%s2067_s27 + $0x20] sm:$0xff]  ;;  %v767_v61 = vld [vmem:[%s2067_s27 + $0x30] sm:$0xff]  ;;  %s1374_s22 = sshll.u32 %s1997_s25, 5 }
  0x2e   : > { %1587 = vmatprep.subr.bf16.mxu0 %v1586_v26  ;;  %v766_v59 = vld [vmem:[%s2067_s27 + $0x28] sm:$0xff]  ;;  %v768_v62 = vld [vmem:[%s2067_s27 + $0x38] sm:$0xff]  ;;  %v769_v0 = vld [vmem:[%s2067_s27 + $0x40] sm:$0xff]  ;;  %s549_s26 = scalar_lea.vmem %s2187_s6, %s1374_s22 }
  0x2f   : > { %v1646_v60 = vpack.c.bf16 %v766_v59, %v765_v58  ;;  %v1650_v63 = vpack.c.bf16 %v768_v62, %v767_v61  ;;  %v770_v1 = vld [vmem:[%s2067_s27 + $0x48] sm:$0xff]  ;;  %v771_v3 = vld [vmem:[%s2067_s27 + $0x50] sm:$0xff]  ;;  %v772_v4 = vld [vmem:[%s2067_s27 + $0x58] sm:$0xff] }
  0x30   : > { %1621 = vmatpush3.bf16.msra.mxu1 %v1618_v22  ;;  %v1654_v2 = vpack.c.bf16 %v770_v1, %v769_v0  ;;  %v1658_v5 = vpack.c.bf16 %v772_v4, %v771_v3  ;;  %v773_v6 = vld [vmem:[%s2067_s27 + $0x60] sm:$0xff]  ;;  %v774_v7 = vld [vmem:[%s2067_s27 + $0x68] sm:$0xff]  ;;  %v775_v9 = vld [vmem:[%s2067_s27 + $0x70] sm:$0xff] }
  0x31   : > { %1623 = vmatprep.subr.bf16.mxu1 %v1622_v30  ;;  %1589 = vmatpush3.bf16.msra.mxu0 %v1586_v26  ;;  %v1662_v8 = vpack.c.bf16 %v774_v7, %v773_v6  ;;  %v776_v10 = vld [vmem:[%s2067_s27 + $0x78] sm:$0xff]  ;;  %v563_v12 = vld [vmem:[%s529_s15] sm:$0xff]  ;;  %v564_v13 = vld [vmem:[%s529_s15 + $0x8] sm:$0xff]  ;;  %s558_s27 = scalar_lea.vmem %s2190_s9, %s1997_s25  ;;  %s514_s25 = scalar_lea.vmem [#allocation3], %s1993_s16 }
  0x32   : > { %1591 = vmatprep.subr.bf16.mxu0 %v1590_v33  ;;  %v1666_v11 = vpack.c.bf16 %v776_v10, %v775_v9  ;;  %v1350_v14 = vld [vmem:[%s555_s12] ss:$0 sm:$0xff]  ;;  %v1032_v32 = vld [vmem:[%s549_s26 + $0x8] sm:$0xff]  ;;  %v1033_v35 = vld [vmem:[%s549_s26 + $0x10] sm:$0xff] }
  0x33   : > { %v1349_v16 = vld [vmem:[%s552_s0] ss:$0 sm:$0xff] }
  0x34   : > { %1625 = vmatpush3.bf16.msra.mxu1 %v1622_v30  ;;  %v1351_v25 = vld [vmem:[%s558_s27] ss:$0 sm:$0xff] }
  0x35   : > { %1627 = vmatprep.subr.bf16.mxu1 %v1626_v36  ;;  %1593 = vmatpush3.bf16.msra.mxu0 %v1590_v33  ;;  %v1031_v31 = vld [vmem:[%s549_s26] sm:$0xff] }
  0x36   : > { %1595 = vmatprep.subr.bf16.mxu0 %v1594_v39  ;;  %v1680_v33 = vpack.c.bf16 %v1032_v32, %v1031_v31 }
  0x38   : > { %1629 = vmatpush3.bf16.msra.mxu1 %v1626_v36  ;;  %v1034_v36 = vld [vmem:[%s549_s26 + $0x18] sm:$0xff] }
  0x39   : > { %1631 = vmatprep.subr.bf16.mxu1 %v1630_v42  ;;  %1597 = vmatpush3.bf16.msra.mxu0 %v1594_v39  ;;  %v1684_v40 = vpack.c.bf16 %v1034_v36, %v1033_v35 }
  0x3a   : > { %1599 = vmatprep.subr.bf16.mxu0 %v1598_v45 }
  0x3c   : > { %1633 = vmatpush3.bf16.msra.mxu1 %v1630_v42 }
  0x3d   : > { %1635 = vmatprep.subr.bf16.mxu1 %v1634_v48  ;;  %1601 = vmatpush3.bf16.msra.mxu0 %v1598_v45  ;;  %v1361_v45 = vld [vmem:[%s2191_s10] ss:$0 sm:$0xff] (!%p1360_p0) }
  0x3e   : > { %1603 = vmatprep.subr.bf16.mxu0 %v1602_v49  ;;  %1127 = vst [vmem:[#allocation2] sm:$0xff] (!%p1360_p0), %v1361_v45  ;;  %1128 = vst [vmem:[#allocation2 + $0x8] sm:$0xff] (!%p1360_p0), %v1361_v45 }
  0x40   : > { %1637 = vmatpush3.bf16.msra.mxu1 %v1634_v48 }
  0x41   : > { %1605 = vmatpush3.bf16.msra.mxu0 %v1602_v49 }
  0x42   : > { %1639 = vmatprep.subr.bf16.mxu0 %v1638_v52 }
  0x43   : > { %1512 = vmatmul.mubr.f32.vlgmr.msra.gmra.mrb[0].mxu1 %v562_v55 }
  0x44   : > { %1477 = vmatmul.mubr.f32.vlgmr.msra.gmra.mrb[0].mxu0 %v560_v56 }
  0x45   : > { %1641 = vmatpush3.bf16.msra.mxu0 %v1638_v52  ;;  %1546 = vmatprep.mubr.f32.mxu0 %v563_v12 }
  0x46   : > { %1643 = vmatprep.subr.bf16.mxu0 %v1642_v57 }
  0x49   : > { %1645 = vmatpush3.bf16.msra.mxu0 %v1642_v57 }
  0x4a   : > { %1647 = vmatprep.subr.bf16.mxu0 %v1646_v60 }
  0x4d   : > { %1649 = vmatpush3.bf16.msra.mxu0 %v1646_v60 }
  0x4e   : > { %1651 = vmatprep.subr.bf16.mxu0 %v1650_v63 }
  0x51   : > { %1653 = vmatpush3.bf16.msra.mxu0 %v1650_v63 }
  0x52   : > { %1655 = vmatprep.subr.bf16.mxu0 %v1654_v2 }
  0x55   : > { %1657 = vmatpush3.bf16.msra.mxu0 %v1654_v2 }
  0x56   : > { %1659 = vmatprep.subr.bf16.mxu0 %v1658_v5 }
  0x59   : > { %1661 = vmatpush3.bf16.msra.mxu0 %v1658_v5 }
  0x5a   : > { %1663 = vmatprep.subr.bf16.mxu0 %v1662_v8 }
  0x5d   : > { %1665 = vmatpush3.bf16.msra.mxu0 %v1662_v8 }
  0x5e   : > { %1667 = vmatprep.subr.bf16.mxu0 %v1666_v11 }
  0x61   : > { %1669 = vmatpush3.bf16.msra.mxu0 %v1666_v11 }
  0x64   : > { %1547 = vmatmul.mubr.f32.vlgmr.msra.gmra.mrb[2].mxu0 %v564_v13 }
 0x116   : > { %v1513_v15 = vpop.f32.mrb[0].mxu1 }
 0x117   : > { %v758_v17 = vadd.f32 %v1513_v15, %v1350_v14  ;;  %v752_v18 = vpop.f32.mrb[1].mxu1  ;;  %v1478_v19 = vpop.f32.mrb[0].mxu0 }
 0x118   : > { %v753_v20 = vadd.f32 %v1350_v14, %v752_v18  ;;  %v654_v21 = vpop.f32.mrb[1].mxu0  ;;  %v660_v24 = vadd.f32 %v1478_v19, %v1349_v16 }
 0x119   : > { %v655_v22 = vadd.f32 %v1349_v16, %v654_v21 }
 0x11a   : > { %v1670_v23 = vpack.c.bf16 %v758_v17, %v753_v20 }
 0x11b   : > { %1553 = vmatprep.mubr.msk.f32.mxu1 %vm859_vm0, %v655_v22 }
 0x11c   : > { %1672 = vmatprep.subr.msk.bf16.mxu1 %vm1671_vm1, %v1670_v23 }
 0x11d   : > { %1675 = vmatpush3.bf16.xpose.msk.msra.mxu1 %vm1671_vm1, %v1670_v23 }
 0x124   : > { %1554 = vmatmul.mubr.msk.f32.vlgmr.msra.gmra.mrb[2].mxu1 %vm859_vm0, %v660_v24 }
 0x137   : > { %v1548_v26 = vpop.f32.mrb[2].mxu0 }
 0x138   : > { %v856_v27 = vadd.f32 %v1548_v26, %v1351_v25  ;;  %v850_v28 = vpop.f32.mrb[3].mxu0 }
 0x139   : > { %v851_v29 = vadd.f32 %v1351_v25, %v850_v28 }
 0x13b   : > { %v1676_v30 = vpack.c.bf16 %v856_v27, %v851_v29 }
 0x13d   : > { %1677 = vmatprep.subr.bf16.mxu1 %v1676_v30 }
 0x13e   : > { %1679 = vmatpush3.bf16.msra.mxu1 %v1676_v30 }
 0x13f   : > { %1681 = vmatprep.subr.bf16.mxu1 %v1680_v33 }
 0x1f7   : > { %v1555_v34 = vpop.f32.mrb[2].mxu1 }
 0x1f8   : > { %v938_v37 = vpop.f32.mrb[3].mxu1  ;;  %v948_v39 = vmul.f32 0.17677669, %v1555_v34 }
 0x1f9   : > { %v947_v38 = vmul.f32 0.17677669, %v938_v37 }
 0x1fb   : > { %1560 = vmatprep.mubr.msk.f32.mxu1 %vm949_vm2, %v947_v38 }
 0x1fc   : > { %1561 = vmatmul.mubr.msk.f32.vlgmr.msra.gmra.mrb[4].mxu1 %vm949_vm2, %v948_v39 }
 0x1fd   : > { %1683 = vmatpush3.bf16.msra.mxu1 %v1680_v33 }
 0x1fe   : > { %1685 = vmatprep.subr.bf16.mxu1 %v1684_v40 }
 0x201   : > { %1687 = vmatpush3.bf16.msra.mxu1 %v1684_v40 }
 0x2cf   : > { %v1562_v41 = vpop.f32.mrb[4].mxu1 }
 0x2d0   : > { %v1022_v42 = vpop.f32.mrb[5].mxu1 }
 0x2d1   : > { %1571 = vmatprep.mubr.msk.f32.mxu1 %vm859_vm0, %v1022_v42 }
 0x2d2   : > { %1572 = vmatmul.mubr.msk.f32.vlgmr.msra.gmra.mrb[6].mxu1 %vm859_vm0, %v1562_v41 }
 0x3a0   : > { %1119 = sbr.rel (%p1360_p0) target bundleno = 935 (0x3a7), region = 68 }
 0x3a5   : > { %v1573_v43 = vpop.f32.mrb[6].mxu1 }
 0x3a6   : > { %v1107_v44 = vpop.f32.mrb[7].mxu1 }
 0x3a7 PF: > { %v1129_v46 = vld [vmem:[#allocation2] sm:$0xff]  ;;  %v1130_v47 = vld [vmem:[#allocation2 + $0x8] sm:$0xff]  ;;  %p1362_p1 = scmp.ne.s32.totalorder %s1839_s20, 3 }
 0x3a8   : > { %v1131_v48 = vadd.f32 %v1129_v46, %v1107_v44  ;;  %v1132_v49 = vadd.f32 %v1573_v43, %v1130_v47 }
 0x3a9   : > { %1138 = sbr.rel (%p1362_p1) target bundleno = 947 (0x3b3), region = 72 }
 0x3aa   : > { %1133 = vst [vmem:[#allocation2] sm:$0xff] %v1131_v48  ;;  %1134 = vst [vmem:[#allocation2 + $0x8] sm:$0xff] %v1132_v49 }
 0x3b1   : > { %v1139_v50 = vld [vmem:[#allocation2] sm:$0xff]  ;;  %v1140_v51 = vld [vmem:[#allocation2 + $0x8] sm:$0xff] }
 0x3b2   : > { %1141 = vst [vmem:[%s514_s25] sm:$0xff] %v1139_v50  ;;  %1142 = vst [vmem:[%s514_s25 + $0x8] sm:$0xff] %v1140_v51 }
 0x3b3 PF: > { %s1375_s16 = sshll.u32 %s1843_s21, 8  ;;  %s1157_s0 = sshll.u32 %s514_s25, 4  ;;  %s2125_s0 = int_to_ptr.vmem [resolvable:$true] %s1157_s0 }
 0x3b4   : > { %s2123_s23 = scalar_lea.hbm %s2192_s11, %s1375_s16  ;;  %s2209_s27 = sand.u32 1, %s1831_s18  }
 0x3b5   : > { %s2129_s20 = scalar_lea.sflag [#allocation4], %s2209_s27  ;;  %s1761_s22 = scalar_lea.vmem %s2125_s0, 256 }
 0x3b6   : > { %p1762_p2 = scmp.ne.s32.totalorder %s2125_s0, %s1761_s22  ;;  %s1857_s21 = smov [#allocation3]  }
 0x3b7   : > { %s1765_s28 = sshll.u32 %s1857_s21, 4  ;;  %s1766_s28 = int_to_ptr.vmem [resolvable:$false] %s1765_s28 }
 0x3b8   : > { %p1763_p4 = pnand %p1762_p2, %p1969_p3  ;;  %s1767_s15 = scalar_lea.vmem %s1766_s28, 512 }
 0x3b9   : > { %p1768_p6 = scmp.lt.s32.totalorder %s2125_s0, %s1766_s28  ;;  %p1769_p7 = scmp.lt.s32.totalorder %s1767_s15, %s1761_s22 }
 0x3ba   : > { %p1764_p5 = pneg %p1763_p4 }
 0x3bb   : > { %p1770_p8 = por %p1769_p7, %p1768_p6 }
 0x3bd   : > { %p1771_p10 = pnand %p1770_p8, %p1764_p5 }
 0x3bf   : > { %1774 = shalt.err (!%p1771_p10)
}
 0x3c0   : > { %s1775_s26 = scalar_lea.hbm %s2123_s23, 256  ;;  %s1779_s12 = scalar_lea.hbm %s2192_s11, 512 }
 0x3c1   : > { %p1776_p11 = scmp.ne.s32.totalorder %s2123_s23, %s1775_s26  ;;  %p1780_p0 = scmp.lt.u32.totalorder %s2123_s23, %s2192_s11 }
 0x3c2   : > { %p1781_p1 = scmp.lt.u32.totalorder %s1779_s12, %s1775_s26  ;;  %p1783_p4 = scmp.lt.u32.totalorder %s1775_s26, %s2123_s23 }
 0x3c3   : > { %p1777_p12 = pnand %p1776_p11, %p1969_p3 }
 0x3c4   : > { %p1782_p2 = por %p1781_p1, %p1780_p0 }
 0x3c5   : > { %p1778_p13 = pneg %p1777_p12 }
 0x3c6   : > { %p1784_p5 = por %p1783_p4, %p1782_p2 }
 0x3c8   : > { %p1785_p6 = pnand %p1784_p5, %p1778_p13 }
 0x3ca   : > { %1788 = shalt.err (!%p1785_p6)
}
 0x3cb   : > { %s1858_s4 = smov 128   ;;  %s1859_s27 = smov 8  }
 0x3cc   : > { %1688 = dma.vmem_to_hbm [thread:$0]  (%p1969_p3), %s2125_s0, 256, %s2123_s23, %s2129_s20, %s1858_s4, %s1858_s4, %s1859_s27  }
 0x3cd PF: > { %p1694_p7 = scmp.ge.s32.totalorder %s1855_s24, 2  ;;  %s1172_s22 = sand.u32 1, %s1827_s17  }
 0x3ce   : > { %s1173_s21 = scalar_lea.sflag [#allocation4], %s1172_s22 }
 0x3cf   : > { %p1691_p8 = pnand %p1694_p7, %p1979_p9 }
 0x3d1   : > { %1822 = dma.done.wait (!%p1691_p8), %s1173_s21, 256  }
 0x3d2   : > { %1824 = vsyncadd (!%p1691_p8), %s1173_s21, 4294967040  ;;  %s24_s24 = sadd.s32 1, %s1855_s24   ;;  %s2210_s20 = sld [smem:[#allocation6_spill]] }
 0x3d3   : > { %p21_p10 = scmp.ge.s32.totalorder %s24_s24, 10   ;;  %s2211_s21 = sld [smem:[#allocation7_spill]] }
 0x3d4   : > { %s2212_s22 = sld [smem:[#allocation8_spill]]  ;;  %s2213_s23 = sld [smem:[#allocation9_spill]] }
 0x3d5   : > { %s2214_s17 = smov %s1831_s18  ;;  %s2215_s18 = smov %s1835_s19 }
 0x3d6   : > { %s2216_s19 = smov %s1987_s14  ;;  %23 = sbr.rel (!%p21_p10) target bundleno = 9 (0x9), region = 134 }
 0x3dd   :  { %1178 = vsyncpa [#allocation4], 1 }
 0x3de   :  { %1180 = vsyncpa [#allocation4 + $0x1], 1 }

</bundles_post_ra>
